<compile_context>
chip_gen: v6e
topology: v6e:2x2x1
jax: 0.10.0
libtpu: 0.0.40
codegen_flags: <defaults>
</compile_context>

<pallas_src>
import jax
import jax.numpy as jnp
from jax.experimental import pallas as pl
from jax.experimental.pallas import tpu as pltpu


def _make_pos_embed_kernel(chunks):
    """Build a kernel that copies the given static (start_row, n_rows) chunks.

    chunks is a Python list of static tuples, so the generated kernel contains
    a fixed number of DMA descriptors (start all, then wait all).
    """

    def kernel(w_pos_ref, o_ref, sems):
        # w_pos_ref: (n_ctx, d_model) raw HBM ref (no auto-DMA).
        # o_ref:     (seq_len, d_model) raw HBM ref for the output.
        # sems:      DMA semaphore array, one per chunk.
        copies = []
        for i, (start, size) in enumerate(chunks):
            cp = pltpu.make_async_copy(
                w_pos_ref.at[pl.ds(start, size), :],  # static contiguous slice
                o_ref.at[pl.ds(start, size), :],
                sems.at[i],
            )
            cp.start()
            copies.append(cp)
        for cp in copies:
            cp.wait()

    return kernel


def pos_embed(
    tokens: jax.Array,
    w_pos: jax.Array,
    *,
    max_chunks: int = 8,
    chunk_threshold_bytes: int = 4 * 1024 * 1024,
) -> jax.Array:
    """Pallas equivalent of PosEmbed.forward.

    tokens: int array of shape (batch, seq_len) -- only its shape is used.
    w_pos:  float32 array of shape (n_ctx, d_model).
    returns: float32 array of shape (seq_len, d_model) == w_pos[:seq_len].
    """
    seq_len = tokens.shape[1]
    n_ctx, d_model = w_pos.shape
    assert seq_len <= n_ctx, "seq_len must not exceed n_ctx"

    itemsize = jnp.dtype(w_pos.dtype).itemsize
    copy_bytes = seq_len * d_model * itemsize

    # Size-gated chunking: only split the DMA when the copy is large enough
    # that multiple in-flight descriptors help (v7x); small copies stay as a
    # single DMA (v5e/v6e and the launch-overhead-bound regime).
    if copy_bytes >= chunk_threshold_bytes:
        num_chunks = min(max_chunks, seq_len)
    else:
        num_chunks = 1
    rows_per_chunk = pl.cdiv(seq_len, num_chunks)

    chunks = []
    start = 0
    while start < seq_len:
        size = min(rows_per_chunk, seq_len - start)
        chunks.append((start, size))
        start += size
    num_chunks = len(chunks)

    kernel = _make_pos_embed_kernel(chunks)

    return pl.pallas_call(
        kernel,
        out_shape=jax.ShapeDtypeStruct((seq_len, d_model), w_pos.dtype),
        # Keep both operands in HBM; the kernel body issues the DMA(s) itself.
        in_specs=[pl.BlockSpec(memory_space=pl.ANY)],
        out_specs=pl.BlockSpec(memory_space=pl.ANY),
        scratch_shapes=[pltpu.SemaphoreType.DMA((num_chunks,))],
        # Pure copy: read + write of the prefix, no flops.
        cost_estimate=pl.CostEstimate(
            flops=0,
            transcendentals=0,
            bytes_accessed=2 * copy_bytes,
        ),
    )(w_pos)


if __name__ == "__main__":
    # Small config consistent with the module (scaled down from GPT-2 sizes).
    n_ctx = 64
    d_model = 128
    init_range = 0.02
    batch = 2
    seq_len = 8

    key = jax.random.PRNGKey(0)
    k_w, k_tok = jax.random.split(key)

    # Deterministic parameter init: W_pos ~ Normal(0, init_range), as in
    # nn.init.normal_(self.W_pos, std=cfg.init_range).
    w_pos = (init_range * jax.random.normal(k_w, (n_ctx, d_model))).astype(jnp.float32)

    # Token ids (values are irrelevant to PosEmbed; only the shape matters).
    tokens = jax.random.randint(k_tok, (batch, seq_len), 0, 1000, dtype=jnp.int32)

    out = pos_embed(tokens, w_pos)
    out = jax.block_until_ready(out)

    # Reference check against plain JAX (== W_pos[arange(seq_len)]).
    ref = w_pos[jnp.arange(seq_len)]
    assert out.shape == (seq_len, d_model)
    assert out.dtype == jnp.float32
    assert jnp.allclose(out, ref)

    # Also exercise the chunked (multi-descriptor) path at a larger shape to
    # make sure it lowers and matches the reference.
    big_n_ctx, big_d_model, big_seq = 2048, 768, 1536  # 1536*768*4 B ≈ 4.5 MiB
    w_pos_big = (init_range * jax.random.normal(k_w, (big_n_ctx, big_d_model))).astype(
        jnp.float32
    )
    tokens_big = jnp.zeros((1, big_seq), dtype=jnp.int32)
    out_big = jax.block_until_ready(pos_embed(tokens_big, w_pos_big))
    assert out_big.shape == (big_seq, big_d_model)
    assert jnp.allclose(out_big, w_pos_big[:big_seq])

    print("KERNEL_OK")
</pallas_src>

<mosaic_0001>
module attributes {stable_mosaic.version = 11 : i64} {
  func.func @kernel(%arg0: memref<64x128xf32, #tpu.memory_space<any>>, %arg1: memref<8x128xf32, #tpu.memory_space<any>>, %arg2: memref<1x!tpu.dma_semaphore, #tpu.memory_space<semaphore_mem>>) attributes {dimension_semantics = [], scalar_prefetch = 0 : i64, scratch_operands = 1 : i64, tpu.core_type = #tpu.core_type<tc>} {
    %c0_i32 = arith.constant 0 : i32
    %c0_i32_0 = arith.constant 0 : i32
    %c0_i32_1 = arith.constant 0 : i32
    %0 = tpu.memref_slice %arg0[%c0_i32_0, %c0_i32_1] : memref<64x128xf32, #tpu.memory_space<any>> -> memref<8x128xf32, #tpu.memory_space<any>>
    %c0_i32_2 = arith.constant 0 : i32
    %c0_i32_3 = arith.constant 0 : i32
    %1 = tpu.memref_slice %arg1[%c0_i32_2, %c0_i32_3] : memref<8x128xf32, #tpu.memory_space<any>> -> memref<8x128xf32, #tpu.memory_space<any>>
    %2 = tpu.memref_slice %arg2[%c0_i32] : memref<1x!tpu.dma_semaphore, #tpu.memory_space<semaphore_mem>> -> memref<1x!tpu.dma_semaphore, #tpu.memory_space<semaphore_mem>>
    %3 = tpu.memref_squeeze %2 : memref<1x!tpu.dma_semaphore, #tpu.memory_space<semaphore_mem>> -> memref<!tpu.dma_semaphore, #tpu.memory_space<semaphore_mem>>
    tpu.enqueue_dma source(%0 : memref<8x128xf32, #tpu.memory_space<any>>) target(%1 : memref<8x128xf32, #tpu.memory_space<any>>) target_semaphore(%3 : memref<!tpu.dma_semaphore, #tpu.memory_space<semaphore_mem>>)
    %c0_i32_4 = arith.constant 0 : i32
    %c0_i32_5 = arith.constant 0 : i32
    %c0_i32_6 = arith.constant 0 : i32
    %4 = tpu.memref_slice %arg0[%c0_i32_5, %c0_i32_6] : memref<64x128xf32, #tpu.memory_space<any>> -> memref<8x128xf32, #tpu.memory_space<any>>
    %c0_i32_7 = arith.constant 0 : i32
    %c0_i32_8 = arith.constant 0 : i32
    %5 = tpu.memref_slice %arg1[%c0_i32_7, %c0_i32_8] : memref<8x128xf32, #tpu.memory_space<any>> -> memref<8x128xf32, #tpu.memory_space<any>>
    %6 = tpu.memref_slice %arg2[%c0_i32_4] : memref<1x!tpu.dma_semaphore, #tpu.memory_space<semaphore_mem>> -> memref<1x!tpu.dma_semaphore, #tpu.memory_space<semaphore_mem>>
    %7 = tpu.memref_squeeze %6 : memref<1x!tpu.dma_semaphore, #tpu.memory_space<semaphore_mem>> -> memref<!tpu.dma_semaphore, #tpu.memory_space<semaphore_mem>>
    tpu.wait_dma2 semaphore(%7 : memref<!tpu.dma_semaphore, #tpu.memory_space<semaphore_mem>>) src(%4 : memref<8x128xf32, #tpu.memory_space<any>>) dst(%5 : memref<8x128xf32, #tpu.memory_space<any>>)
    return
  }
}

</mosaic_0001>

<bundles_post_ra>
// kernel: tpu_custom_call.1
= control target key start
LH: loop header
LB: loop body
LE: loop exit
PB: predicated region body
PF: predicated region fallthrough
CT: control target
= control target key end

     0   :  { %s28_s6 = smov [#allocation2]   ;;  %s29_s7 = smov 131072   ;;  %s47_s0 = inlined_call_operand.hbm [shape: f32[64,128], index: 0, kind: input, shape index: {}]   ;;  %s48_s1 = inlined_call_operand.hbm [shape: f32[8,128], index: 1, kind: output, shape index: {}]  }
   0x1   :  { %s30_s8 = smov 0  }
   0x2   :  { %12 = dma.general %s47_s0, 128, %s48_s1, %s28_s6, %s29_s7, [#allocation4], %s30_s8, 0  }
   0x3   :  { %26 = dma.done.wait [#allocation2], 128 }
   0x4   :  { %27 = vsyncadd [#allocation2], 4294967168 }
   0x5   :  { %16 = vsyncmov [#allocation2] }
   0x8   :  { %s17_s13 = vpop.sfrf %16 }
   0x9   :  { %p22_p0 = scmp.ne.s32.totalorder %s17_s13, 0 }
   0xb   :  { %21 = shalt.err (%p22_p0)  }

</bundles_post_ra>
